<compile_context>
chip_gen: v7x
topology: tpu7x:2x2x1
jax: 0.10.0
libtpu: 0.0.40
codegen_flags: <defaults>
</compile_context>

<pallas_src>
import functools

import jax
import jax.numpy as jnp
from jax.experimental import pallas as pl
from jax.experimental.pallas import tpu as pltpu


_MAX_BLOCK_ROWS = 2048          # measured: 512-2048 row tiles hit 85%+ of HBM roofline
_VMEM_TILE_BUDGET = 24 << 20    # per-step tile budget; safe under v7x 32 MiB scoped VMEM


def _round_up(n, m):
    return ((n + m - 1) // m) * m


def _cdiv(a, b):
    return -(-a // b)


def _default_bf16_activations():
    """bf16 VALU exists on v6e/v7x; keep f32 activations elsewhere (e.g. v5e)."""
    try:
        kind = jax.devices()[0].device_kind.lower()
        return ("v6" in kind) or ("v7" in kind)
    except Exception:
        return False


def _pick_block_rows(B, in_dim, h1_pad, h2_pad, out_pad,
                     x_itemsize, out_itemsize, w_resident_bytes):
    """Fattest row tile that fits the VMEM budget, with >= 2 grid steps."""
    per_row = (2 * in_dim * x_itemsize            # double-buffered x tile (f32)
               + 2 * out_pad * out_itemsize       # double-buffered out tile (bf16)
               + (h1_pad + h2_pad) * 6)           # f32 + bf16 intermediates
    budget = max(_VMEM_TILE_BUDGET - 2 * w_resident_bytes, 1 << 20)
    rows = (budget // per_row) // 8 * 8
    rows = min(rows, _MAX_BLOCK_ROWS)
    # >= 2 grid steps so dimension_semantics=("parallel",) shards across both v7x TCs.
    rows = min(rows, _round_up(_cdiv(B, 2), 8))
    return max(rows, 8)


def _mlp_kernel(x_ref, w1_ref, b1_ref, w2_ref, b2_ref, w3_ref, b3_ref, o_ref,
                *, act_dtype):
    # One batch row-tile per grid step; weights/biases are VMEM-resident.
    w_dtype = w1_ref.dtype
    x = x_ref[...].astype(w_dtype)   # f32 -> bf16 in-kernel (no wrapper HBM pass)

    # Hoist bias reads (single (1, lanes) vreg rows).
    b1 = b1_ref[...]
    b2 = b2_ref[...]
    b3 = b3_ref[...]

    # fc1 + relu  (bf16 operands, f32 MXU accumulation; relu in act_dtype)
    h1 = jnp.dot(x, w1_ref[...], preferred_element_type=jnp.float32) + b1
    h1 = jnp.maximum(h1.astype(act_dtype), 0).astype(w_dtype)

    # fc2 + relu
    h2 = jnp.dot(h1, w2_ref[...], preferred_element_type=jnp.float32) + b2
    h2 = jnp.maximum(h2.astype(act_dtype), 0).astype(w_dtype)

    # fc3 (no activation)
    out = jnp.dot(h2, w3_ref[...], preferred_element_type=jnp.float32) + b3
    o_ref[...] = out.astype(o_ref.dtype)


def prepare_mlp_params(params, operand_dtype=jnp.bfloat16):
    """One-time prep (hoisted out of the forward path): pad lane dims to 128
    multiples and cast weights to bf16. Biases stay f32 (added post-accumulation)."""
    in_dim, h1_dim = params["w1"].shape
    h2_dim = params["w2"].shape[1]
    out_dim = params["w3"].shape[1]
    h1_pad = _round_up(h1_dim, 128)
    h2_pad = _round_up(h2_dim, 128)
    out_pad = _round_up(out_dim, 128)

    def pad2(a, rows, cols):
        r, c = a.shape
        return jnp.pad(a, ((0, rows - r), (0, cols - c))).astype(operand_dtype)

    def padb(b, cols):
        return jnp.pad(b, (0, cols - b.shape[0])).reshape(1, -1).astype(jnp.float32)

    return {
        "w1": pad2(params["w1"], in_dim, h1_pad),
        "b1": padb(params["b1"], h1_pad),
        "w2": pad2(params["w2"], h1_pad, h2_pad),
        "b2": padb(params["b2"], h2_pad),
        "w3": pad2(params["w3"], h2_pad, out_pad),
        "b3": padb(params["b3"], out_pad),
        "out_dim": out_dim,   # python int; close over this dict under jit
    }


def mlp_forward(x, prepared, *, block_rows=None, out_dtype=jnp.bfloat16,
                trim_output=True, bf16_activations=None):
    """x: (B, in_dim) float32 (passed through untouched; cast to bf16 in-kernel).
    prepared: output of prepare_mlp_params. Set trim_output=False to get the
    lane-padded output (no extra HBM slice pass); lanes >= out_dim are padding."""
    B, in_dim = x.shape
    assert in_dim == prepared["w1"].shape[0]
    h1_pad = prepared["w1"].shape[1]
    h2_pad = prepared["w2"].shape[1]
    out_pad = prepared["w3"].shape[1]
    out_dim = prepared["out_dim"]

    w_args = (prepared["w1"], prepared["b1"], prepared["w2"], prepared["b2"],
              prepared["w3"], prepared["b3"])
    w_resident = sum(int(a.size) * a.dtype.itemsize for a in w_args)

    out_itemsize = jnp.dtype(out_dtype).itemsize
    if block_rows is None:
        block_rows = _pick_block_rows(B, in_dim, h1_pad, h2_pad, out_pad,
                                      x.dtype.itemsize, out_itemsize, w_resident)
    block_rows = max(8, (min(block_rows, _round_up(B, 8)) // 8) * 8)
    grid_rows = _cdiv(B, block_rows)   # partial last tile: OOB reads are harmless
                                       # (rows are independent), OOB writes masked.

    if bf16_activations is None:
        bf16_activations = _default_bf16_activations()
    act_dtype = jnp.bfloat16 if bf16_activations else jnp.float32

    # Cost estimate consistent with the padded shapes actually executed.
    rows_exec = grid_rows * block_rows
    flops = 2 * rows_exec * (in_dim * h1_pad + h1_pad * h2_pad + h2_pad * out_pad)
    bytes_accessed = (int(x.size) * x.dtype.itemsize
                      + w_resident
                      + B * out_pad * out_itemsize)

    # Explicit VMEM budget (double-buffered tiles + resident weights + headroom).
    vmem_needed = (2 * w_resident
                   + 2 * block_rows * in_dim * x.dtype.itemsize
                   + 2 * block_rows * out_pad * out_itemsize
                   + block_rows * (h1_pad + h2_pad) * 6
                   + (2 << 20))
    vmem_limit = int(min(max(vmem_needed, 16 << 20), 48 << 20))

    kernel = functools.partial(_mlp_kernel, act_dtype=act_dtype)

    out = pl.pallas_call(
        kernel,
        out_shape=jax.ShapeDtypeStruct((B, out_pad), out_dtype),
        grid=(grid_rows,),
        in_specs=[
            pl.BlockSpec((block_rows, in_dim), lambda i: (i, 0)),  # x row-tile per step
            pl.BlockSpec((in_dim, h1_pad), lambda i: (0, 0)),      # weights/biases resident
            pl.BlockSpec((1, h1_pad), lambda i: (0, 0)),
            pl.BlockSpec((h1_pad, h2_pad), lambda i: (0, 0)),
            pl.BlockSpec((1, h2_pad), lambda i: (0, 0)),
            pl.BlockSpec((h2_pad, out_pad), lambda i: (0, 0)),
            pl.BlockSpec((1, out_pad), lambda i: (0, 0)),
        ],
        out_specs=pl.BlockSpec((block_rows, out_pad), lambda i: (i, 0)),
        compiler_params=pltpu.CompilerParams(
            dimension_semantics=("parallel",),   # megacore sharding on v7x
            vmem_limit_bytes=vmem_limit,
        ),
        cost_estimate=pl.CostEstimate(
            flops=flops, transcendentals=0, bytes_accessed=bytes_accessed),
    )(x, *w_args)

    if trim_output:
        out = out[:, :out_dim]   # fuses away under jit; skip via trim_output=False
    return out


def init_mlp_params(key, in_dim, out_dim):
    """Deterministic init mimicking nn.Linear default: U(-1/sqrt(fan_in), 1/sqrt(fan_in))."""
    dims = [(in_dim, 120), (120, 84), (84, out_dim)]
    params = {}
    keys = jax.random.split(key, 2 * len(dims))
    for i, (fan_in, fan_out) in enumerate(dims):
        bound = 1.0 / (fan_in ** 0.5)
        w = jax.random.uniform(keys[2 * i], (fan_in, fan_out), jnp.float32, -bound, bound)
        b = jax.random.uniform(keys[2 * i + 1], (fan_out,), jnp.float32, -bound, bound)
        params[f"w{i + 1}"] = w
        params[f"b{i + 1}"] = b
    return params


def mlp_reference_f32(x, params):
    h = jnp.maximum(x @ params["w1"] + params["b1"], 0.0)
    h = jnp.maximum(h @ params["w2"] + params["b2"], 0.0)
    return h @ params["w3"] + params["b3"]


def mlp_reference_bf16(x, params, operand_dtype=jnp.bfloat16):
    """Reference mimicking the kernel's operand casts (bf16 ops, f32 accumulation)."""
    f32 = jnp.float32
    q = lambda a: a.astype(operand_dtype).astype(f32)
    h = jnp.maximum(q(x) @ q(params["w1"]) + params["b1"], 0.0)
    h = jnp.maximum(q(h) @ q(params["w2"]) + params["b2"], 0.0)
    return q(h) @ q(params["w3"]) + params["b3"]


if __name__ == "__main__":
    key = jax.random.PRNGKey(0)
    k_x, k_p = jax.random.split(key)

    batch, in_dim, out_dim = 200, 32, 10  # non-multiple batch exercises partial-tile path
    x = jax.random.normal(k_x, (batch, in_dim), jnp.float32)
    params = init_mlp_params(k_p, in_dim, out_dim)

    prepared = prepare_mlp_params(params)                    # one-time pad + bf16 cast
    fwd = jax.jit(lambda xx: mlp_forward(xx, prepared))      # slice fuses under jit

    out = jax.block_until_ready(fwd(x)).astype(jnp.float32)
    assert out.shape == (batch, out_dim)

    ref_bf16 = mlp_reference_bf16(x, params)
    ref_f32 = mlp_reference_f32(x, params)
    assert jnp.allclose(out, ref_bf16, atol=2e-2, rtol=2e-2)
    assert jnp.allclose(out, ref_f32, atol=8e-2, rtol=8e-2)

    # Padded-output fast path (no post-call slice; consumer ignores lanes >= out_dim).
    out_padded = jax.block_until_ready(mlp_forward(x, prepared, trim_output=False))
    assert out_padded.shape == (batch, 128)
    assert jnp.allclose(out_padded[:, :out_dim].astype(jnp.float32), out,
                        atol=1e-6, rtol=1e-6)

    print("KERNEL_OK")
</pallas_src>

<mosaic_0001>
module attributes {stable_mosaic.version = 11 : i64} {
  func.func @_mlp_kernel(%arg0: i32, %arg1: memref<104x32xf32, #tpu.memory_space<vmem>>, %arg2: memref<32x128xbf16, #tpu.memory_space<vmem>>, %arg3: memref<1x128xf32, #tpu.memory_space<vmem>>, %arg4: memref<128x128xbf16, #tpu.memory_space<vmem>>, %arg5: memref<1x128xf32, #tpu.memory_space<vmem>>, %arg6: memref<128x128xbf16, #tpu.memory_space<vmem>>, %arg7: memref<1x128xf32, #tpu.memory_space<vmem>>, %arg8: memref<104x128xbf16, #tpu.memory_space<vmem>>) attributes {dimension_semantics = [#tpu.dimension_semantics<parallel>], iteration_bounds = array<i64: 2>, scalar_prefetch = 0 : i64, scratch_operands = 0 : i64, tpu.core_type = #tpu.core_type<tc>, window_params = [{transform_indices = @transform_0, window_bounds = array<i64: 104, 32>}, {pipeline_mode = #tpu.pipeline_mode<synchronous>, transform_indices = @transform_1, window_bounds = array<i64: 32, 128>}, {pipeline_mode = #tpu.pipeline_mode<synchronous>, transform_indices = @transform_2, window_bounds = array<i64: 1, 128>}, {pipeline_mode = #tpu.pipeline_mode<synchronous>, transform_indices = @transform_3, window_bounds = array<i64: 128, 128>}, {pipeline_mode = #tpu.pipeline_mode<synchronous>, transform_indices = @transform_4, window_bounds = array<i64: 1, 128>}, {pipeline_mode = #tpu.pipeline_mode<synchronous>, transform_indices = @transform_5, window_bounds = array<i64: 128, 128>}, {pipeline_mode = #tpu.pipeline_mode<synchronous>, transform_indices = @transform_6, window_bounds = array<i64: 1, 128>}, {transform_indices = @transform_7, window_bounds = array<i64: 104, 128>}]} {
    %c0 = arith.constant 0 : index
    %c0_0 = arith.constant 0 : index
    %0 = vector.load %arg1[%c0, %c0_0] : memref<104x32xf32, #tpu.memory_space<vmem>>, vector<104x32xf32>
    %1 = arith.truncf %0 : vector<104x32xf32> to vector<104x32xbf16>
    %c0_1 = arith.constant 0 : index
    %c0_2 = arith.constant 0 : index
    %2 = vector.load %arg3[%c0_1, %c0_2] : memref<1x128xf32, #tpu.memory_space<vmem>>, vector<1x128xf32>
    %c0_3 = arith.constant 0 : index
    %c0_4 = arith.constant 0 : index
    %3 = vector.load %arg5[%c0_3, %c0_4] : memref<1x128xf32, #tpu.memory_space<vmem>>, vector<1x128xf32>
    %c0_5 = arith.constant 0 : index
    %c0_6 = arith.constant 0 : index
    %4 = vector.load %arg7[%c0_5, %c0_6] : memref<1x128xf32, #tpu.memory_space<vmem>>, vector<1x128xf32>
    %c0_7 = arith.constant 0 : index
    %c0_8 = arith.constant 0 : index
    %5 = vector.load %arg2[%c0_7, %c0_8] : memref<32x128xbf16, #tpu.memory_space<vmem>>, vector<32x128xbf16>
    %cst = arith.constant dense<0.000000e+00> : vector<104x128xf32>
    %6 = tpu.matmul %1, %5, %cst {dimension_numbers = #tpu.dot_dimension_numbers<[1], [0], [0], [1], [0, 0, 1, 1], [], []>} : vector<104x32xbf16>, vector<32x128xbf16>, vector<104x128xf32> -> vector<104x128xf32>
    %7 = vector.broadcast %2 : vector<1x128xf32> to vector<104x128xf32>
    %8 = arith.addf %6, %7 : vector<104x128xf32>
    %cst_9 = arith.constant 0.000000e+00 : f32
    %9 = vector.broadcast %cst_9 : f32 to vector<104x128xf32>
    %10 = arith.maximumf %8, %9 : vector<104x128xf32>
    %11 = arith.truncf %10 : vector<104x128xf32> to vector<104x128xbf16>
    %c0_10 = arith.constant 0 : index
    %c0_11 = arith.constant 0 : index
    %12 = vector.load %arg4[%c0_10, %c0_11] : memref<128x128xbf16, #tpu.memory_space<vmem>>, vector<128x128xbf16>
    %cst_12 = arith.constant dense<0.000000e+00> : vector<104x128xf32>
    %13 = tpu.matmul %11, %12, %cst_12 {dimension_numbers = #tpu.dot_dimension_numbers<[1], [0], [0], [1], [0, 0, 1, 1], [], []>} : vector<104x128xbf16>, vector<128x128xbf16>, vector<104x128xf32> -> vector<104x128xf32>
    %14 = vector.broadcast %3 : vector<1x128xf32> to vector<104x128xf32>
    %15 = arith.addf %13, %14 : vector<104x128xf32>
    %cst_13 = arith.constant 0.000000e+00 : f32
    %16 = vector.broadcast %cst_13 : f32 to vector<104x128xf32>
    %17 = arith.maximumf %15, %16 : vector<104x128xf32>
    %18 = arith.truncf %17 : vector<104x128xf32> to vector<104x128xbf16>
    %c0_14 = arith.constant 0 : index
    %c0_15 = arith.constant 0 : index
    %19 = vector.load %arg6[%c0_14, %c0_15] : memref<128x128xbf16, #tpu.memory_space<vmem>>, vector<128x128xbf16>
    %cst_16 = arith.constant dense<0.000000e+00> : vector<104x128xf32>
    %20 = tpu.matmul %18, %19, %cst_16 {dimension_numbers = #tpu.dot_dimension_numbers<[1], [0], [0], [1], [0, 0, 1, 1], [], []>} : vector<104x128xbf16>, vector<128x128xbf16>, vector<104x128xf32> -> vector<104x128xf32>
    %21 = vector.broadcast %4 : vector<1x128xf32> to vector<104x128xf32>
    %22 = arith.addf %20, %21 : vector<104x128xf32>
    %23 = arith.truncf %22 : vector<104x128xf32> to vector<104x128xbf16>
    %c0_17 = arith.constant 0 : index
    %c0_18 = arith.constant 0 : index
    %24 = vector.load %arg8[%c0_17, %c0_18] : memref<104x128xbf16, #tpu.memory_space<vmem>>, vector<104x128xbf16>
    tpu.vector_store %arg8[%c0_17, %c0_18], %23 {strides = array<i32>} : memref<104x128xbf16, #tpu.memory_space<vmem>>, vector<104x128xbf16>,
    return
  }
  func.func @transform_0(%arg0: i32) -> (i32, i32) {
    %c0_i32 = arith.constant 0 : i32
    %c0_i32_0 = arith.constant 0 : i32
    return %arg0, %c0_i32 : i32, i32
  }
  func.func @transform_1(%arg0: i32) -> (i32, i32) {
    %c0_i32 = arith.constant 0 : i32
    %c0_i32_0 = arith.constant 0 : i32
    %c0_i32_1 = arith.constant 0 : i32
    return %c0_i32, %c0_i32_0 : i32, i32
  }
  func.func @transform_2(%arg0: i32) -> (i32, i32) {
    %c0_i32 = arith.constant 0 : i32
    %c0_i32_0 = arith.constant 0 : i32
    %c0_i32_1 = arith.constant 0 : i32
    return %c0_i32, %c0_i32_0 : i32, i32
  }
  func.func @transform_3(%arg0: i32) -> (i32, i32) {
    %c0_i32 = arith.constant 0 : i32
    %c0_i32_0 = arith.constant 0 : i32
    %c0_i32_1 = arith.constant 0 : i32
    return %c0_i32, %c0_i32_0 : i32, i32
  }
  func.func @transform_4(%arg0: i32) -> (i32, i32) {
    %c0_i32 = arith.constant 0 : i32
    %c0_i32_0 = arith.constant 0 : i32
    %c0_i32_1 = arith.constant 0 : i32
    return %c0_i32, %c0_i32_0 : i32, i32
  }
  func.func @transform_5(%arg0: i32) -> (i32, i32) {
    %c0_i32 = arith.constant 0 : i32
    %c0_i32_0 = arith.constant 0 : i32
    %c0_i32_1 = arith.constant 0 : i32
    return %c0_i32, %c0_i32_0 : i32, i32
  }
  func.func @transform_6(%arg0: i32) -> (i32, i32) {
    %c0_i32 = arith.constant 0 : i32
    %c0_i32_0 = arith.constant 0 : i32
    %c0_i32_1 = arith.constant 0 : i32
    return %c0_i32, %c0_i32_0 : i32, i32
  }
  func.func @transform_7(%arg0: i32) -> (i32, i32) {
    %c0_i32 = arith.constant 0 : i32
    %c0_i32_0 = arith.constant 0 : i32
    return %arg0, %c0_i32 : i32, i32
  }
}

</mosaic_0001>

<bundles_post_ra>
// kernel: _lambda_.1
= control target key start
LH: loop header
LB: loop body
LE: loop exit
PB: predicated region body
PF: predicated region fallthrough
CT: control target
= control target key end

     0   :  { %s1656_s24 = smov 0   ;;  %s1658_s25 = smov 0   ;;  %s1957_s0 = inlined_call_operand.vmem [shape: f32[200,32], index: 0, kind: input, shape index: {}]   ;;  %s1958_s1 = inlined_call_operand.vmem [shape: bf16[32,128], index: 1, kind: input, shape index: {}]   ;;  %s1959_s2 = inlined_call_operand.vmem [shape: f32[1,128], index: 2, kind: input, shape index: {}]   ;;  %s1960_s3 = inlined_call_operand.vmem [shape: bf16[128,128], index: 3, kind: input, shape index: {}]   ;;  %s1961_s4 = inlined_call_operand.vmem [shape: f32[1,128], index: 4, kind: input, shape index: {}]   ;;  %s1962_s5 = inlined_call_operand.vmem [shape: bf16[128,128], index: 5, kind: input, shape index: {}]   ;;  %s1963_s6 = inlined_call_operand.vmem [shape: f32[1,128], index: 6, kind: input, shape index: {}]   ;;  %s1964_s7 = inlined_call_operand.vmem [shape: bf16[200,128], index: 7, kind: output, shape index: {}]  }
   0x1   :  { %s1660_s26 = smov 0  }
   0x2 LB: > { %s1669_s27 = sadd.s32 4294967295, %s1580_s26   ;;  %s1671_s28 = sadd.s32 1, %s1580_s26   ;;  %s1580_s26 = sphi %s1660_s26, %s1971_s26   ;;  %s1576_s25 = sphi %s1658_s25, %s1970_s25   ;;  %s1572_s24 = sphi %s1656_s24, %s1969_s24  }
   0x3   : > { %s173_s29 = ssub.s32 %s1580_s26, %s1671_s28  ;;  %s176_s30 = sadd.s32 1, %s1576_s25 }
   0x4   : > { %p174_p0 = scmp.eq.s32.totalorder %s173_s29, 0  ;;  %p186_p1 = scmp.ne.s32.totalorder %s1576_s25, %s1572_s24 }
   0x5   : > { %p187_p2 = scmp.eq.s32.totalorder %s1669_s27, 1  ;;  %p1145_p3 = scmp.ge.s32.totalorder %s1580_s26, 1 }
   0x6   : > { %s1679_s8 = scalar_select %p174_p0, %s1576_s25, %s176_s30  }
   0x7   : > { %p1681_p4 = por %p187_p2, %p186_p1  ;;  %p246_p5 = scmp.lt.s32.totalorder %s1580_s26, 3 }
   0x9   : > { %p247_p6 = pnand %p1145_p3, %p246_p5 }
   0xa   : > { %v1504_v0 = vld [vmem:[%s1958_s1] sm:$0xff] (!%p247_p6)   ;;  %v1614_v1 = vmov (!%p247_p6), 0.0   ;;  %v1505_v2 = vld [vmem:[%s1958_s1 + $0x8] sm:$0xff] (!%p247_p6)   ;;  %vm1615_vm0 = vmmov (!%p247_p6), 0   ;;  %s1696_s14 = smul.u32 (!%p247_p6), 13, %s1669_s27  ;;  %vm346_vm1 = vcmask (!%p247_p6), 261120  }
   0xb   : > { %250 = sbr.rel (%p247_p6) target bundleno = 800 (0x320), region = 48  ;;  %1288 = vmatprep.subr.bf16.mxu0 (!%p247_p6), %v1614_v1  ;;  %1408 = vmatprep.subr.bf16.mxu1 (!%p247_p6), %v1614_v1  ;;  %v1506_v9 = vld [vmem:[%s1960_s3] sm:$0xff] (!%p247_p6)   ;;  %v1507_v14 = vld [vmem:[%s1960_s3 + $0x8] sm:$0xff] (!%p247_p6)   ;;  %v1508_v17 = vld [vmem:[%s1960_s3 + $0x10] sm:$0xff] (!%p247_p6)   ;;  %s278_s26 = sand.u32 (!%p247_p6), 1, %s1572_s24  }
   0xc   : > { %1289 = vmatpush3.bf16.msra.mxu0 (!%p247_p6), %v1504_v0  ;;  %1292 = vmatprep.mubr.msk.bf16.mxu0 (!%p247_p6), %vm1615_vm0, %v1614_v1  ;;  %p286_p7 = scmp.lt.s32.totalorder (!%p247_p6), %s1696_s14, 24  ;;  %v1509_v22 = vld [vmem:[%s1960_s3 + $0x18] sm:$0xff] (!%p247_p6)   ;;  %v1510_v24 = vld [vmem:[%s1960_s3 + $0x20] sm:$0xff] (!%p247_p6)   ;;  %v1511_v28 = vld [vmem:[%s1960_s3 + $0x28] sm:$0xff] (!%p247_p6)   ;;  %s1412_s10 = smul.u32 (!%p247_p6), 52, %s278_s26 }
   0xd   : > { %1290 = vmatprep.subr.bf16.mxu0 (!%p247_p6), %v1614_v1  ;;  %1410 = vmatpush3.bf16.msra.mxu1 (!%p247_p6), %v1504_v0  ;;  %v1512_v29 = vld [vmem:[%s1960_s3 + $0x30] sm:$0xff] (!%p247_p6)   ;;  %v1513_v30 = vld [vmem:[%s1960_s3 + $0x38] sm:$0xff] (!%p247_p6)   ;;  %v1514_v31 = vld [vmem:[%s1962_s5] sm:$0xff] (!%p247_p6)  }
   0xe   : > { %1409 = vmatprep.subr.bf16.mxu1 (!%p247_p6), %v1614_v1  ;;  %1308 = vmatprep.mubr.msk.bf16.mxu1 (!%p247_p6), %vm1615_vm0, %v1614_v1  ;;  %v1515_v32 = vld [vmem:[%s1962_s5 + $0x8] sm:$0xff] (!%p247_p6)   ;;  %v1516_v33 = vld [vmem:[%s1962_s5 + $0x10] sm:$0xff] (!%p247_p6)   ;;  %v1517_v34 = vld [vmem:[%s1962_s5 + $0x18] sm:$0xff] (!%p247_p6)   ;;  %s1871_s11 = scalar_lea.vmem (!%p247_p6), [#allocation2], %s1412_s10  }
   0xf   : > { %v1518_v35 = vld [vmem:[%s1962_s5 + $0x20] sm:$0xff] (!%p247_p6)   ;;  %v1519_v36 = vld [vmem:[%s1962_s5 + $0x28] sm:$0xff] (!%p247_p6)  }
  0x10   : > { %1291 = vmatpush3.bf16.msra.mxu0 (!%p247_p6), %v1505_v2  ;;  %v1803_v37 = vld [vmem:[%s1959_s2] ss:$0 sm:$0xff] (!%p247_p6) }
  0x11   : > { %1411 = vmatpush3.bf16.msra.mxu1 (!%p247_p6), %v1505_v2  ;;  %1364 = vmatprep.subr.bf16.mxu0 (!%p247_p6), %v1614_v1 }
  0x12   : > { %s287_s15 = scalar_select %p286_p7, %s1696_s14, 24  ;;  %1320 = vmatprep.subr.bf16.mxu1 %v1614_v1 }
  0x13   : > { %s886_s24 = ssub.s32 (%p1681_p4), 25, %s1696_s14  ;;  %s1213_s12 = smul.u32 (%p1681_p4), 52, %s1669_s27 }
  0x14   : > { %s1146_s16 = sshll.u32 %s287_s15, 3  ;;  %p887_p8 = scmp.lt.s32.totalorder (%p1681_p4), %s886_s24, 13 }
  0x15   : > { %s1709_s19 = scalar_lea.vmem %s1957_s0, %s1146_s16  ;;  %s1887_s16 = scalar_lea.vmem (%p1681_p4), %s1964_s7, %s1213_s12  }
  0x16   : > { %v301_v3 = vld [vmem:[%s1709_s19] sm:$0xff]  ;;  %v302_v4 = vld [vmem:[%s1709_s19 + $0x8] sm:$0xff]  ;;  %v303_v7 = vld [vmem:[%s1709_s19 + $0x10] sm:$0xff] }
  0x17   : > { %v314_v5 = vpack.c.bf16 %v302_v4, %v301_v3  ;;  %v309_v6 = vld [vmem:[%s1709_s19 + $0x40] sm:$0xff]  ;;  %v310_v8 = vld [vmem:[%s1709_s19 + $0x48] sm:$0xff]  ;;  %v304_v10 = vld [vmem:[%s1709_s19 + $0x18] sm:$0xff] }
  0x18   : > { %v318_v11 = vpack.c.bf16 %v310_v8, %v309_v6  ;;  %v311_v12 = vld [vmem:[%s1709_s19 + $0x50] sm:$0xff]  ;;  %v312_v13 = vld [vmem:[%s1709_s19 + $0x58] sm:$0xff]  ;;  %v315_v15 = vpack.c.bf16 %v304_v10, %v303_v7  ;;  %v305_v18 = vld [vmem:[%s1709_s19 + $0x20] sm:$0xff] }
  0x19   : > { %1293 = vmatmul.mubr.msk.bf16.vlgmr.msra.gmra.mrb[0].mxu0 %vm346_vm1, %v314_v5  ;;  %v319_v16 = vpack.c.bf16 %v312_v13, %v311_v12  ;;  %v306_v19 = vld [vmem:[%s1709_s19 + $0x28] sm:$0xff]  ;;  %v313_v21 = vld [vmem:[%s1709_s19 + $0x60] sm:$0xff]  ;;  %v307_v25 = vld [vmem:[%s1709_s19 + $0x30] sm:$0xff] }
  0x1a   : > { %1296 = vmatprep.mubr.msk.bf16.mxu0 %vm1615_vm0, %v1614_v1  ;;  %1309 = vmatmul.mubr.msk.bf16.vlgmr.msra.gmra.mrb[0].mxu1 %vm346_vm1, %v318_v11  ;;  %v316_v20 = vpack.c.bf16 %v306_v19, %v305_v18  ;;  %v320_v23 = vpack.c.bf16 %v313_v21, %v313_v21  ;;  %v308_v26 = vld [vmem:[%s1709_s19 + $0x38] sm:$0xff] }
  0x1b   : > { %1312 = vmatprep.mubr.msk.bf16.mxu1 %vm1615_vm0, %v1614_v1  ;;  %1321 = vmatpush3.bf16.msra.mxu1 %v1506_v9  ;;  %v317_v27 = vpack.c.bf16 %v308_v26, %v307_v25 }
  0x1c   : > { %1322 = vmatprep.subr.bf16.mxu1 %v1614_v1  ;;  %1365 = vmatpush3.bf16.msra.mxu0 %v1514_v31 }
  0x1d   : > { %1366 = vmatprep.subr.bf16.mxu0 %v1614_v1 }
  0x1f   : > { %1323 = vmatpush3.bf16.msra.mxu1 %v1507_v14 }
  0x20   : > { %1324 = vmatprep.subr.bf16.mxu1 %v1614_v1  ;;  %1367 = vmatpush3.bf16.msra.mxu0 %v1515_v32 }
  0x21   : > { %1297 = vmatmul.mubr.msk.bf16.gmra.mrb[4].mxu0 %vm346_vm1, %v315_v15  ;;  %1368 = vmatprep.subr.bf16.mxu0 %v1614_v1 }
  0x22   : > { %1300 = vmatprep.mubr.msk.bf16.mxu0 %vm1615_vm0, %v1614_v1  ;;  %1313 = vmatmul.mubr.msk.bf16.gmra.mrb[4].mxu1 %vm346_vm1, %v319_v16 }
  0x23   : > { %1316 = vmatprep.mubr.msk.bf16.mxu1 %vm1615_vm0, %v1614_v1  ;;  %1325 = vmatpush3.bf16.msra.mxu1 %v1508_v17 }
  0x24   : > { %1326 = vmatprep.subr.bf16.mxu1 %v1614_v1  ;;  %1369 = vmatpush3.bf16.msra.mxu0 %v1516_v33 }
  0x25   : > { %1370 = vmatprep.subr.bf16.mxu0 %v1614_v1 }
  0x27   : > { %1327 = vmatpush3.bf16.msra.mxu1 %v1509_v22 }
  0x28   : > { %1328 = vmatprep.subr.bf16.mxu1 %v1614_v1  ;;  %1371 = vmatpush3.bf16.msra.mxu0 %v1517_v34 }
  0x29   : > { %1301 = vmatmul.mubr.msk.bf16.gmra.mrb[8].mxu0 %vm346_vm1, %v316_v20  ;;  %1372 = vmatprep.subr.bf16.mxu0 %v1614_v1 }
  0x2a   : > { %1304 = vmatprep.mubr.msk.bf16.mxu0 %vm1615_vm0, %v1614_v1  ;;  %1317 = vmatmul.mubr.msk.bf16.gmra.mrb[8].mxu1 %vm346_vm1, %v320_v23 }
  0x2b   : > { %1329 = vmatpush3.bf16.msra.mxu1 %v1510_v24  ;;  %1336 = vmatprep.mubr.msk.bf16.mxu1 %vm1615_vm0, %v1614_v1 }
  0x2c   : > { %1330 = vmatprep.subr.bf16.mxu1 %v1614_v1  ;;  %1373 = vmatpush3.bf16.msra.mxu0 %v1518_v35 }
  0x2d   : > { %1374 = vmatprep.subr.bf16.mxu0 %v1614_v1 }
  0x2f   : > { %1331 = vmatpush3.bf16.msra.mxu1 %v1511_v28 }
  0x30   : > { %1332 = vmatprep.subr.bf16.mxu1 %v1614_v1  ;;  %1375 = vmatpush3.bf16.msra.mxu0 %v1519_v36  ;;  %v1520_v36 = vld [vmem:[%s1962_s5 + $0x30] sm:$0xff]  }
  0x31   : > { %1305 = vmatmul.mubr.msk.bf16.gmra.mrb[12].mxu0 %vm346_vm1, %v317_v27  ;;  %1376 = vmatprep.subr.bf16.mxu0 %v1614_v1 }
  0x32   : > { %1380 = vmatprep.mubr.msk.bf16.mxu0 %vm1615_vm0, %v1614_v1 }
  0x33   : > { %1333 = vmatpush3.bf16.msra.mxu1 %v1512_v29 }
  0x34   : > { %1334 = vmatprep.subr.bf16.mxu1 %v1614_v1  ;;  %1377 = vmatpush3.bf16.msra.mxu0 %v1520_v36 }
  0x35   : > { %1378 = vmatprep.subr.bf16.mxu0 %v1614_v1 }
  0x37   : > { %1335 = vmatpush3.bf16.msra.mxu1 %v1513_v30 }
  0xec   : > { %v402_v38 = vpop.f32.mrb[0].mxu0 }
  0xed   : > { %v403_v39 = vadd.f32 %v1803_v37, %v402_v38  ;;  %v1294_v40 = vpop.f32.mrb[1].mxu0  ;;  %v434_v44 = vpop.f32.mrb[0].mxu1  ;;  %v1521_v38 = vld [vmem:[%s1962_s5 + $0x38] sm:$0xff]  }
  0xee   : > { %v405_v41 = vpop.f32.mrb[2].mxu0  ;;  %v435_v45 = vadd.f32 %v1803_v37, %v434_v44  ;;  %v1310_v46 = vpop.f32.mrb[1].mxu1  ;;  %1379 = vmatpush3.bf16.msra.mxu0 %v1521_v38  ;;  %v1166_v38 = vld [vmem:[%s1963_s6] ss:$0 sm:$0xff] }
  0xef   : > { %v406_v42 = vadd.f32 %v1803_v37, %v405_v41  ;;  %v1295_v43 = vpop.f32.mrb[3].mxu0  ;;  %v456_v47 = vmax.f32 %v403_v39, 0.0  ;;  %v437_v49 = vpop.f32.mrb[2].mxu1 }
  0xf0   : > { %v464_v50 = vmax.f32 %v435_v45, 0.0  ;;  %v438_v51 = vadd.f32 %v1803_v37, %v437_v49  ;;  %v1311_v52 = vpop.f32.mrb[3].mxu1 }
  0xf1   : > { %v457_v48 = vmax.f32 %v406_v42, 0.0 }
  0xf2   : > { %v465_v55 = vmax.f32 %v438_v51, 0.0 }
  0xf3   : > { %v469_v53 = vpack.c.bf16 %v457_v48, %v456_v47 }
  0xf4   : > { %v410_v54 = vpop.f32.mrb[4].mxu0  ;;  %v473_v59 = vpack.c.bf16 %v465_v55, %v464_v50 }
  0xf5   : > { %v411_v56 = vadd.f32 %v1803_v37, %v410_v54  ;;  %v1298_v57 = vpop.f32.mrb[5].mxu0  ;;  %1337 = vmatmul.mubr.bf16.vlgmr.msra.gmra.mrb[12].mxu1 %v469_v53  ;;  %v442_v62 = vpop.f32.mrb[4].mxu1 }
  0xf6   : > { %v413_v58 = vpop.f32.mrb[6].mxu0  ;;  %1340 = vmatprep.mubr.msk.bf16.mxu1 %vm1615_vm0, %v1614_v1  ;;  %v443_v63 = vadd.f32 %v1803_v37, %v442_v62  ;;  %v1314_v0 = vpop.f32.mrb[5].mxu1 }
  0xf7   : > { %v414_v60 = vadd.f32 %v1803_v37, %v413_v58  ;;  %v1299_v61 = vpop.f32.mrb[7].mxu0  ;;  %v458_v2 = vmax.f32 %v411_v56, 0.0  ;;  %v445_v4 = vpop.f32.mrb[6].mxu1 }
  0xf8   : > { %v466_v5 = vmax.f32 %v443_v63, 0.0  ;;  %v446_v6 = vadd.f32 %v1803_v37, %v445_v4  ;;  %v1315_v7 = vpop.f32.mrb[7].mxu1 }
  0xf9   : > { %v459_v3 = vmax.f32 %v414_v60, 0.0 }
  0xfa   : > { %v467_v10 = vmax.f32 %v446_v6, 0.0 }
  0xfb   : > { %v470_v8 = vpack.c.bf16 %v459_v3, %v458_v2 }
  0xfc   : > { %v418_v9 = vpop.f32.mrb[8].mxu0  ;;  %v474_v14 = vpack.c.bf16 %v467_v10, %v466_v5 }
  0xfd   : > { %v419_v11 = vadd.f32 %v1803_v37, %v418_v9  ;;  %v1302_v12 = vpop.f32.mrb[9].mxu0  ;;  %1341 = vmatmul.mubr.bf16.gmra.mrb[16].mxu1 %v470_v8  ;;  %v450_v17 = vpop.f32.mrb[8].mxu1 }
  0xfe   : > { %v421_v13 = vpop.f32.mrb[10].mxu0  ;;  %1344 = vmatprep.mubr.msk.bf16.mxu1 %vm1615_vm0, %v1614_v1  ;;  %v1318_v18 = vpop.f32.mrb[9].mxu1  ;;  %v451_v33 = vadd.f32 %v1803_v37, %v450_v17 }
  0xff   : > { %v422_v15 = vadd.f32 %v1803_v37, %v421_v13  ;;  %v1303_v16 = vpop.f32.mrb[11].mxu0  ;;  %v460_v19 = vmax.f32 %v419_v11, 0.0  ;;  %v453_v21 = vpop.f32.mrb[10].mxu1 }
 0x100   : > { %v1319_v22 = vpop.f32.mrb[11].mxu1  ;;  %v468_v34 = vmax.f32 %v451_v33, 0.0 }
 0x101   : > { %v461_v20 = vmax.f32 %v422_v15, 0.0 }
 0x102   : > { %v475_v35 = vpack.c.bf16 %v468_v34, %v468_v34 }
 0x103   : > { %v471_v23 = vpack.c.bf16 %v461_v20, %v460_v19 }
 0x104   : > { %v426_v24 = vpop.f32.mrb[12].mxu0 }
 0x105   : > { %v427_v25 = vadd.f32 %v1803_v37, %v426_v24  ;;  %v1306_v26 = vpop.f32.mrb[13].mxu0  ;;  %1345 = vmatmul.mubr.bf16.gmra.mrb[20].mxu1 %v471_v23 }
 0x106   : > { %v429_v27 = vpop.f32.mrb[14].mxu0  ;;  %1348 = vmatprep.mubr.msk.bf16.mxu1 %vm1615_vm0, %v1614_v1 }
 0x107   : > { %v430_v28 = vadd.f32 %v1803_v37, %v429_v27  ;;  %v1307_v29 = vpop.f32.mrb[15].mxu0  ;;  %v462_v30 = vmax.f32 %v427_v25, 0.0  ;;  %v1840_v37 = vld [vmem:[%s1961_s4] ss:$0 sm:$0xff] }
 0x109   : > { %v463_v31 = vmax.f32 %v430_v28, 0.0 }
 0x10b   : > { %v472_v32 = vpack.c.bf16 %v463_v31, %v462_v30 }
 0x10d   : > { %1349 = vmatmul.mubr.bf16.gmra.mrb[24].mxu1 %v472_v32 }
 0x10e   : > { %1352 = vmatprep.mubr.msk.bf16.mxu1 %vm1615_vm0, %v1614_v1 }
 0x115   : > { %1353 = vmatmul.mubr.bf16.gmra.mrb[28].mxu1 %v473_v59 }
 0x116   : > { %1356 = vmatprep.mubr.msk.bf16.mxu1 %vm1615_vm0, %v1614_v1 }
 0x11d   : > { %1357 = vmatmul.mubr.bf16.gmra.mrb[32].mxu1 %v474_v14 }
 0x11e   : > { %1360 = vmatprep.mubr.msk.bf16.mxu1 %vm1615_vm0, %v1614_v1 }
 0x125   : > { %1361 = vmatmul.mubr.bf16.gmra.mrb[36].mxu1 %v475_v35 }
 0x1c8   : > { %v580_v39 = vpop.f32.mrb[12].mxu1 }
 0x1c9   : > { %v581_v40 = vadd.f32 %v1840_v37, %v580_v39  ;;  %v1338_v41 = vpop.f32.mrb[13].mxu1 }
 0x1ca   : > { %v583_v42 = vpop.f32.mrb[14].mxu1 }
 0x1cb   : > { %v584_v43 = vadd.f32 %v1840_v37, %v583_v42  ;;  %v1339_v44 = vpop.f32.mrb[15].mxu1  ;;  %v634_v45 = vmax.f32 %v581_v40, 0.0 }
 0x1cd   : > { %v635_v46 = vmax.f32 %v584_v43, 0.0 }
 0x1cf   : > { %v647_v47 = vpack.c.bf16 %v635_v46, %v634_v45 }
 0x1d0   : > { %v588_v48 = vpop.f32.mrb[16].mxu1 }
 0x1d1   : > { %v589_v49 = vadd.f32 %v1840_v37, %v588_v48  ;;  %v1342_v50 = vpop.f32.mrb[17].mxu1  ;;  %1381 = vmatmul.mubr.bf16.vlgmr.msra.gmra.mrb[16].mxu0 %v647_v47 }
 0x1d2   : > { %v591_v51 = vpop.f32.mrb[18].mxu1  ;;  %1384 = vmatprep.mubr.msk.bf16.mxu0 %vm1615_vm0, %v1614_v1 }
 0x1d3   : > { %v592_v52 = vadd.f32 %v1840_v37, %v591_v51  ;;  %v1343_v53 = vpop.f32.mrb[19].mxu1  ;;  %v636_v54 = vmax.f32 %v589_v49, 0.0 }
 0x1d5   : > { %v637_v55 = vmax.f32 %v592_v52, 0.0 }
 0x1d7   : > { %v648_v56 = vpack.c.bf16 %v637_v55, %v636_v54 }
 0x1d8   : > { %v596_v57 = vpop.f32.mrb[20].mxu1 }
 0x1d9   : > { %v597_v58 = vadd.f32 %v1840_v37, %v596_v57  ;;  %v1346_v59 = vpop.f32.mrb[21].mxu1  ;;  %1385 = vmatmul.mubr.bf16.gmra.mrb[20].mxu0 %v648_v56 }
 0x1da   : > { %v599_v60 = vpop.f32.mrb[22].mxu1  ;;  %1388 = vmatprep.mubr.msk.bf16.mxu0 %vm1615_vm0, %v1614_v1 }
 0x1db   : > { %v600_v61 = vadd.f32 %v1840_v37, %v599_v60  ;;  %v1347_v62 = vpop.f32.mrb[23].mxu1  ;;  %v638_v63 = vmax.f32 %v597_v58, 0.0 }
 0x1dd   : > { %v639_v0 = vmax.f32 %v600_v61, 0.0 }
 0x1df   : > { %v649_v2 = vpack.c.bf16 %v639_v0, %v638_v63 }
 0x1e0   : > { %v604_v3 = vpop.f32.mrb[24].mxu1 }
 0x1e1   : > { %v605_v4 = vadd.f32 %v1840_v37, %v604_v3  ;;  %v1350_v5 = vpop.f32.mrb[25].mxu1  ;;  %1389 = vmatmul.mubr.bf16.gmra.mrb[24].mxu0 %v649_v2 }
 0x1e2   : > { %v607_v6 = vpop.f32.mrb[26].mxu1  ;;  %1392 = vmatprep.mubr.msk.bf16.mxu0 %vm1615_vm0, %v1614_v1 }
 0x1e3   : > { %v608_v7 = vadd.f32 %v1840_v37, %v607_v6  ;;  %v1351_v8 = vpop.f32.mrb[27].mxu1  ;;  %v640_v9 = vmax.f32 %v605_v4, 0.0 }
 0x1e5   : > { %v641_v10 = vmax.f32 %v608_v7, 0.0 }
 0x1e7   : > { %v650_v11 = vpack.c.bf16 %v641_v10, %v640_v9 }
 0x1e8   : > { %v612_v12 = vpop.f32.mrb[28].mxu1 }
 0x1e9   : > { %v613_v13 = vadd.f32 %v1840_v37, %v612_v12  ;;  %v1354_v14 = vpop.f32.mrb[29].mxu1  ;;  %1393 = vmatmul.mubr.bf16.gmra.mrb[28].mxu0 %v650_v11 }
 0x1ea   : > { %v615_v15 = vpop.f32.mrb[30].mxu1  ;;  %1396 = vmatprep.mubr.msk.bf16.mxu0 %vm1615_vm0, %v1614_v1 }
 0x1eb   : > { %v616_v16 = vadd.f32 %v1840_v37, %v615_v15  ;;  %v1355_v17 = vpop.f32.mrb[31].mxu1  ;;  %v642_v18 = vmax.f32 %v613_v13, 0.0 }
 0x1ed   : > { %v643_v19 = vmax.f32 %v616_v16, 0.0 }
 0x1ef   : > { %v651_v20 = vpack.c.bf16 %v643_v19, %v642_v18 }
 0x1f0   : > { %v620_v21 = vpop.f32.mrb[32].mxu1 }
 0x1f1   : > { %v621_v22 = vadd.f32 %v1840_v37, %v620_v21  ;;  %v1358_v23 = vpop.f32.mrb[33].mxu1  ;;  %1397 = vmatmul.mubr.bf16.gmra.mrb[32].mxu0 %v651_v20 }
 0x1f2   : > { %v623_v24 = vpop.f32.mrb[34].mxu1  ;;  %1400 = vmatprep.mubr.msk.bf16.mxu0 %vm1615_vm0, %v1614_v1 }
 0x1f3   : > { %v624_v25 = vadd.f32 %v1840_v37, %v623_v24  ;;  %v1359_v26 = vpop.f32.mrb[35].mxu1  ;;  %v644_v27 = vmax.f32 %v621_v22, 0.0 }
 0x1f5   : > { %v645_v28 = vmax.f32 %v624_v25, 0.0 }
 0x1f7   : > { %v652_v29 = vpack.c.bf16 %v645_v28, %v644_v27 }
 0x1f8   : > { %v628_v30 = vpop.f32.mrb[36].mxu1 }
 0x1f9   : > { %v629_v31 = vadd.f32 %v1840_v37, %v628_v30  ;;  %v1362_v32 = vpop.f32.mrb[37].mxu1  ;;  %1401 = vmatmul.mubr.bf16.gmra.mrb[36].mxu0 %v652_v29 }
 0x1fa   : > { %v631_v33 = vpop.f32.mrb[38].mxu1  ;;  %1404 = vmatprep.mubr.msk.bf16.mxu0 %vm1615_vm0, %v1614_v1 }
 0x1fb   : > { %v646_v34 = vmax.f32 %v629_v31, 0.0  ;;  %v1363_v35 = vpop.f32.mrb[39].mxu1 }
 0x1fd   : > { %v653_v36 = vpack.c.bf16 %v646_v34, %v646_v34 }
 0x201   : > { %1405 = vmatmul.mubr.bf16.gmra.mrb[40].mxu0 %v653_v36 }
 0x2a4   : > { %v758_v39 = vpop.f32.mrb[16].mxu0 }
 0x2a5   : > { %v1382_v40 = vpop.f32.mrb[17].mxu0  ;;  %v759_v37 = vadd.f32 %v1166_v38, %v758_v39 }
 0x2a6   : > { %v761_v41 = vpop.f32.mrb[18].mxu0 }
 0x2a7   : > { %v762_v42 = vadd.f32 %v1166_v38, %v761_v41  ;;  %v1383_v43 = vpop.f32.mrb[19].mxu0 }
 0x2a9   : > { %v1217_v44 = vpack.c.bf16 %v762_v42, %v759_v37 }
 0x2ab   : > { %1218 = vst [vmem:[%s1871_s11] sm:$0xff] %v1217_v44  }
 0x2ac   : > { %v766_v1 = vpop.f32.mrb[20].mxu0 }
 0x2ad   : > { %v1386_v45 = vpop.f32.mrb[21].mxu0  ;;  %v767_v47 = vadd.f32 %v1166_v38, %v766_v1 }
 0x2ae   : > { %v769_v46 = vpop.f32.mrb[22].mxu0 }
 0x2af   : > { %v770_v48 = vadd.f32 %v1166_v38, %v769_v46  ;;  %v1387_v49 = vpop.f32.mrb[23].mxu0 }
 0x2b1   : > { %v1222_v50 = vpack.c.bf16 %v770_v48, %v767_v47 }
 0x2b3   : > { %1244 = vst [vmem:[%s1871_s11 + $0x8] sm:$0xff] %v1222_v50  }
 0x2b4   : > { %v774_v51 = vpop.f32.mrb[24].mxu0 }
 0x2b5   : > { %v1390_v52 = vpop.f32.mrb[25].mxu0  ;;  %v775_v54 = vadd.f32 %v1166_v38, %v774_v51 }
 0x2b6   : > { %v777_v53 = vpop.f32.mrb[26].mxu0 }
 0x2b7   : > { %v778_v55 = vadd.f32 %v1166_v38, %v777_v53  ;;  %v1391_v56 = vpop.f32.mrb[27].mxu0 }
 0x2b9   : > { %v1227_v57 = vpack.c.bf16 %v778_v55, %v775_v54 }
 0x2bb   : > { %1245 = vst [vmem:[%s1871_s11 + $0x10] sm:$0xff] %v1227_v57  }
 0x2bc   : > { %v782_v58 = vpop.f32.mrb[28].mxu0 }
 0x2bd   : > { %v1394_v59 = vpop.f32.mrb[29].mxu0  ;;  %v783_v61 = vadd.f32 %v1166_v38, %v782_v58 }
 0x2be   : > { %v785_v60 = vpop.f32.mrb[30].mxu0 }
 0x2bf   : > { %v786_v62 = vadd.f32 %v1166_v38, %v785_v60  ;;  %v1395_v63 = vpop.f32.mrb[31].mxu0 }
 0x2c1   : > { %v1232_v0 = vpack.c.bf16 %v786_v62, %v783_v61 }
 0x2c3   : > { %1246 = vst [vmem:[%s1871_s11 + $0x18] sm:$0xff] %v1232_v0  }
 0x2c4   : > { %v790_v2 = vpop.f32.mrb[32].mxu0 }
 0x2c5   : > { %v1398_v3 = vpop.f32.mrb[33].mxu0  ;;  %v791_v5 = vadd.f32 %v1166_v38, %v790_v2 }
 0x2c6   : > { %v793_v4 = vpop.f32.mrb[34].mxu0 }
 0x2c7   : > { %v794_v6 = vadd.f32 %v1166_v38, %v793_v4  ;;  %v1399_v7 = vpop.f32.mrb[35].mxu0 }
 0x2c9   : > { %v1237_v8 = vpack.c.bf16 %v794_v6, %v791_v5 }
 0x2cb   : > { %1247 = vst [vmem:[%s1871_s11 + $0x20] sm:$0xff] %v1237_v8  }
 0x2cc   : > { %v798_v9 = vpop.f32.mrb[36].mxu0 }
 0x2cd   : > { %v1402_v10 = vpop.f32.mrb[37].mxu0  ;;  %v799_v12 = vadd.f32 %v1166_v38, %v798_v9 }
 0x2ce   : > { %v801_v11 = vpop.f32.mrb[38].mxu0 }
 0x2cf   : > { %v802_v13 = vadd.f32 %v1166_v38, %v801_v11  ;;  %v1403_v14 = vpop.f32.mrb[39].mxu0 }
 0x2d1   : > { %v1242_v15 = vpack.c.bf16 %v802_v13, %v799_v12 }
 0x2d3   : > { %1248 = vst [vmem:[%s1871_s11 + $0x28] sm:$0xff] %v1242_v15   ;;  %884 = sbr.rel (!%p1681_p4) target bundleno = 800 (0x320), region = 52 }
 0x2d4   : > { %v806_v16 = vpop.f32.mrb[40].mxu0 }
 0x2d5   : > { %v807_v17 = vadd.f32 %v1166_v38, %v806_v16  ;;  %v1406_v18 = vpop.f32.mrb[41].mxu0 }
 0x2d6   : > { %v809_v19 = vpop.f32.mrb[42].mxu0 }
 0x2d7   : > { %v1212_v20 = vpack.c.bf16 %v807_v17, %v807_v17  ;;  %v1407_v21 = vpop.f32.mrb[43].mxu0 }
 0x2d9   : > { %877 = vst [vmem:[%s1871_s11 + $0x30] sm:$0xf] %v1212_v20 }
 0x2da   : > { %s1973_s24 = smov (!%p887_p8, %s886_s24), 13 }
 0x2db   : > { %s1188_s17 = sshll.u32 %s1973_s24, 6 }
 0x2dc   : > { %p1191_p9 = scmp.eq.s32.totalorder %s1188_s17, 0 }
 0x2dd   : > { %1522 = sdivrem.u32 (!%p1191_p9), %s1973_s24, 13 }
 0x2de   : > { %895 = sbr.rel (%p1191_p9) target bundleno = 800 (0x320), region = 56 }
 0x2e6   : > { %s1893_s9 = spop.drf %1522 }
 0x2e7   : > { %p1192_p10 = scmp.le.s32.totalorder %s1893_s9, 0 }
 0x2e8   : > { %s1966_s27 = smov (!%p1192_p10), %s1887_s16  ;;  %s1967_s14 = smov (!%p1192_p10), %s1871_s11 }
 0x2e9   : > { %1098 = sbr.rel (%p1192_p10) target bundleno = 771 (0x303), region = 128  ;;  %s1902_s18 = smov (!%p1192_p10), 0  }
 0x2ea   : > { %s1904_s19 = smov (!%p1192_p10), 0  }
 0x2f0 LB: >> { %v912_v22 = vld [vmem:[%s1588_s14] sm:$0xf]  ;;  %v914_v23 = vld [vmem:[%s1588_s14 + $0x4] sm:$0xf]  ;;  %v916_v24 = vld [vmem:[%s1588_s14 + $0x8] sm:$0xf]  ;;  %s1596_s19 = sphi %s1904_s19, %s906_s19   ;;  %s1592_s18 = sphi %s1902_s18, %s1968_s18   ;;  %s1588_s14 = sphi %s1967_s14, %s943_s14   ;;  %s1584_s27 = sphi %s1966_s27, %s944_s27  }
 0x2f1   : >> { %913 = vst [vmem:[%s1584_s27] sm:$0xf] %v912_v22  ;;  %915 = vst [vmem:[%s1584_s27 + $0x4] sm:$0xf] %v914_v23  ;;  %v918_v25 = vld [vmem:[%s1588_s14 + $0xc] sm:$0xf]  ;;  %s938_s20 = sadd.s32 1, %s1592_s18 }
 0x2f2   : >> { %917 = vst [vmem:[%s1584_s27 + $0x8] sm:$0xf] %v916_v24  ;;  %v920_v26 = vld [vmem:[%s1588_s14 + $0x10] sm:$0xf]  ;;  %v922_v27 = vld [vmem:[%s1588_s14 + $0x14] sm:$0xf]  ;;  %p939_p11 = scmp.ge.s32.totalorder %s938_s20, %s1893_s9 }
 0x2f3   : >> { %919 = vst [vmem:[%s1584_s27 + $0xc] sm:$0xf] %v918_v25  ;;  %921 = vst [vmem:[%s1584_s27 + $0x10] sm:$0xf] %v920_v26  ;;  %v924_v28 = vld [vmem:[%s1588_s14 + $0x18] sm:$0xf] }
 0x2f4   : >> { %923 = vst [vmem:[%s1584_s27 + $0x14] sm:$0xf] %v922_v27  ;;  %v926_v29 = vld [vmem:[%s1588_s14 + $0x1c] sm:$0xf]  ;;  %v928_v30 = vld [vmem:[%s1588_s14 + $0x20] sm:$0xf] }
 0x2f5   : >> { %925 = vst [vmem:[%s1584_s27 + $0x18] sm:$0xf] %v924_v28  ;;  %927 = vst [vmem:[%s1584_s27 + $0x1c] sm:$0xf] %v926_v29  ;;  %v930_v31 = vld [vmem:[%s1588_s14 + $0x24] sm:$0xf] }
 0x2f6   : >> { %929 = vst [vmem:[%s1584_s27 + $0x20] sm:$0xf] %v928_v30  ;;  %v932_v32 = vld [vmem:[%s1588_s14 + $0x28] sm:$0xf]  ;;  %v934_v33 = vld [vmem:[%s1588_s14 + $0x2c] sm:$0xf] }
 0x2f7   : >> { %931 = vst [vmem:[%s1584_s27 + $0x24] sm:$0xf] %v930_v31  ;;  %933 = vst [vmem:[%s1584_s27 + $0x28] sm:$0xf] %v932_v32  ;;  %v936_v34 = vld [vmem:[%s1588_s14 + $0x30] sm:$0xf] }
 0x2f8   : >> { %935 = vst [vmem:[%s1584_s27 + $0x2c] sm:$0xf] %v934_v33  ;;  %937 = vst [vmem:[%s1584_s27 + $0x30] sm:$0xf] %v936_v34  ;;  %s1975_s20 = smov (%p939_p11, %s938_s20), 0  ;;  %s906_s19 = sadd.s32 1, %s1596_s19  }
 0x2f9   : >> { %s941_s21 = smul.u32 52, %s1975_s20  ;;  %p905_p12 = scmp.ge.s32.totalorder %s906_s19, %s1893_s9 }
 0x2fa   : >> { %s1968_s18 = smov %s1975_s20 }
 0x2fb   : >> { %s943_s14 = scalar_lea.vmem %s1871_s11, %s941_s21 [#allocation2]   ;;  %s944_s27 = scalar_lea.vmem %s1887_s16, %s941_s21  }
 0x2fc   : > { %908 = sbr.rel (!%p905_p12) target bundleno = 752 (0x2f0), region = 134 }
 0x303 PF: > { %1524 = sdivrem.u32 %s1973_s24, 13 }
 0x304   : > { %s1193_s22 = smul.u32 52, %s1893_s9 }
 0x306   : > { %s949_s23 = scalar_lea.vmem %s1871_s11, %s1193_s22 [#allocation2]   ;;  %s951_s26 = scalar_lea.vmem %s1887_s16, %s1193_s22  }
 0x30c   : > { %s1525_s29 = spop.drf %1524 }
 0x30d   : > { %p1195_p13 = scmp.le.s32.totalorder %s1525_s29, 0 }
 0x30e   : > { %s1598_s30 = smov (!%p1195_p13), %s951_s26   ;;  %s1602_s10 = smov (!%p1195_p13), %s949_s23  }
 0x30f   : > { %1112 = sbr.rel (%p1195_p13) target bundleno = 800 (0x320), region = 139  ;;  %s1606_s12 = smov (!%p1195_p13), 0  }
 0x310   : > { %s1610_s13 = smov (!%p1195_p13), 0  }
 0x316 LB: >> { %v961_v35 = vld [vmem:[%s1604_s10] sm:$0xf]  ;;  %s963_s15 = sadd.s32 1, %s1608_s12  ;;  %s955_s13 = sadd.s32 1, %s1612_s13   ;;  %s1612_s13 = sphi %s1610_s13, %s955_s13   ;;  %s1608_s12 = sphi %s1606_s12, %s1607_s12   ;;  %s1604_s10 = sphi %s1602_s10, %s968_s10   ;;  %s1600_s30 = sphi %s1598_s30, %s969_s30  }
 0x317   : >> { %962 = vst [vmem:[%s1600_s30] sm:$0xf] %v961_v35  ;;  %p964_p0 = scmp.ge.s32.totalorder %s963_s15, %s1525_s29  ;;  %p954_p1 = scmp.ge.s32.totalorder %s955_s13, %s1525_s29 }
 0x319   : >> { %s1977_s15 = smov (%p964_p0, %s963_s15), 0  ;;  %957 = sbr.rel (!%p954_p1) target bundleno = 790 (0x316), region = 145 }
 0x31a   : >> { %s1196_s11 = sshll.u32 %s1977_s15, 2  ;;  %s1607_s12 = smov %s1977_s15  }
 0x31b   : >> { %s968_s10 = scalar_lea.vmem %s949_s23, %s1196_s11 [#allocation2]   ;;  %s969_s30 = scalar_lea.vmem %s951_s26, %s1196_s11  }
 0x320 PF: > { %p14_p2 = scmp.ge.s32.totalorder %s1671_s28, 4   ;;  %s1969_s24 = smov %s1576_s25 }
 0x321   : > { %s1970_s25 = smov %s1679_s8  ;;  %s1971_s26 = smov %s1671_s28 }
 0x322   :  { %16 = sbr.rel (!%p14_p2) target bundleno = 2 (0x2), region = 156 }

</bundles_post_ra>
